<compile_context>
chip_gen: v5e
topology: v5e:2x2
jax: 0.10.0
libtpu: 0.0.40
codegen_flags: <defaults>
</compile_context>

<pallas_src>
import functools

import jax
import jax.numpy as jnp
from jax.experimental import pallas as pl
from jax.experimental.pallas import tpu as pltpu

_LANES = 128
_SUBLANES = 8
_ROW_ALIGN = 32            # rows multiple of 32 -> valid tiling for f32/bf16/int8
_MAX_BLOCK_ROWS = 4096     # 4096 * 128 * 4 B = 2 MiB per f32 input tile


def _sq_err_partial_kernel(a_ref, b_ref, out_ref, *, block_rows, total_rows,
                           needs_mask):
    d = a_ref[...].astype(jnp.float32) - b_ref[...].astype(jnp.float32)

    if needs_mask:
        # The last grid block reads past `total_rows` (unspecified data) when
        # total_rows % block_rows != 0: zero those rows before squaring.
        i = pl.program_id(0)
        row_in_block = jax.lax.broadcasted_iota(jnp.int32, d.shape, 0)
        valid = (row_in_block + i * block_rows) < total_rows
        d = jnp.where(valid, d, 0.0)

    sq = d * d
    # (block_rows, 128) -> (8, 128) partial sum via vreg+vreg adds (pure VPU,
    # hidden under the input DMA); the single cross-lane reduce runs outside.
    partial = jnp.sum(
        sq.reshape(block_rows // _SUBLANES, _SUBLANES, _LANES), axis=0
    )
    out_ref[...] = partial.reshape(1, _SUBLANES, _LANES)


def rmse_loss(yhat, y, eps=1e-8, *, max_block_rows=_MAX_BLOCK_ROWS):
    """sqrt(mean((yhat - y)**2) + eps), computed on TPU via Pallas."""
    assert yhat.shape == y.shape, "yhat/y shapes must match"
    n_elems = yhat.size

    a = jnp.ravel(yhat)
    b = jnp.ravel(y)

    # Pad only when strictly needed; padded entries are 0 in BOTH inputs so
    # they contribute 0 to the squared-error sum.
    align = _ROW_ALIGN * _LANES
    padded = pl.cdiv(n_elems, align) * align
    if padded != n_elems:
        a = jnp.pad(a, (0, padded - n_elems))
        b = jnp.pad(b, (0, padded - n_elems))
    rows = padded // _LANES
    a2 = a.reshape(rows, _LANES)
    b2 = b.reshape(rows, _LANES)

    block_rows = min(max_block_rows, rows)
    assert block_rows % _SUBLANES == 0
    num_blocks = pl.cdiv(rows, block_rows)
    needs_mask = (rows % block_rows) != 0   # static: skip mask on aligned path

    kernel = functools.partial(
        _sq_err_partial_kernel,
        block_rows=block_rows,
        total_rows=rows,
        needs_mask=needs_mask,
    )

    partials = pl.pallas_call(
        kernel,
        out_shape=jax.ShapeDtypeStruct(
            (num_blocks, _SUBLANES, _LANES), jnp.float32
        ),
        grid=(num_blocks,),
        in_specs=[
            pl.BlockSpec((block_rows, _LANES), lambda i: (i, 0)),
            pl.BlockSpec((block_rows, _LANES), lambda i: (i, 0)),
        ],
        out_specs=pl.BlockSpec((1, _SUBLANES, _LANES), lambda i: (i, 0, 0)),
        compiler_params=pltpu.CompilerParams(
            dimension_semantics=("parallel",)
        ),
    )(a2, b2)

    # Tiny final reduction + epilogue in plain JAX (runs once).
    mse = jnp.sum(partials) / jnp.float32(n_elems)
    return jnp.sqrt(mse + jnp.float32(eps))


if __name__ == "__main__":
    key = jax.random.PRNGKey(0)
    k1, k2, k3, k4 = jax.random.split(key, 4)

    # NCHW, small shapes: batch=2, channels=4, spatial=16
    yhat = jax.random.uniform(k1, (2, 4, 16, 16), dtype=jnp.float32)
    y = jax.random.uniform(k2, (2, 4, 16, 16), dtype=jnp.float32)

    result = jax.block_until_ready(rmse_loss(yhat, y))
    ref = jnp.sqrt(jnp.mean((yhat - y) ** 2) + 1e-8)
    assert jnp.allclose(result, ref, rtol=1e-5, atol=1e-6), (result, ref)

    # Identical inputs -> sqrt(eps)
    zero_res = jax.block_until_ready(rmse_loss(yhat, yhat))
    assert jnp.allclose(zero_res, jnp.sqrt(jnp.float32(1e-8)),
                        rtol=1e-5, atol=1e-7), zero_res

    # Non-divisible element count (exercises the zero-pad path).
    a_odd = jax.random.normal(k3, (3, 5, 7), dtype=jnp.float32)
    b_odd = jax.random.normal(k4, (3, 5, 7), dtype=jnp.float32)
    res_odd = jax.block_until_ready(rmse_loss(a_odd, b_odd))
    ref_odd = jnp.sqrt(jnp.mean((a_odd - b_odd) ** 2) + 1e-8)
    assert jnp.allclose(res_odd, ref_odd, rtol=1e-5, atol=1e-6), (res_odd, ref_odd)

    # Multi-block grid + tail-row masking path (small block_rows on purpose).
    res_mb = jax.block_until_ready(rmse_loss(yhat, y, max_block_rows=24))
    assert jnp.allclose(res_mb, ref, rtol=1e-5, atol=1e-6), (res_mb, ref)

    # bf16 inputs (in-kernel f32 cast path).
    res_bf16 = jax.block_until_ready(
        rmse_loss(yhat.astype(jnp.bfloat16), y.astype(jnp.bfloat16)))
    assert jnp.allclose(res_bf16, ref, rtol=2e-2, atol=2e-2), (res_bf16, ref)

    print("KERNEL_OK")
</pallas_src>

<mosaic_0001>
module attributes {stable_mosaic.version = 11 : i64} {
  func.func @_sq_err_partial_kernel(%arg0: i32, %arg1: memref<32x128xf32, #tpu.memory_space<vmem>>, %arg2: memref<32x128xf32, #tpu.memory_space<vmem>>, %arg3: memref<1x8x128xf32, #tpu.memory_space<vmem>>) attributes {dimension_semantics = [#tpu.dimension_semantics<parallel>], iteration_bounds = array<i64: 1>, scalar_prefetch = 0 : i64, scratch_operands = 0 : i64, tpu.core_type = #tpu.core_type<tc>, window_params = [{transform_indices = @transform_0, window_bounds = array<i64: 32, 128>}, {transform_indices = @transform_1, window_bounds = array<i64: 32, 128>}, {transform_indices = @transform_2, window_bounds = array<i64: 1, 8, 128>}]} {
    %c0 = arith.constant 0 : index
    %c0_0 = arith.constant 0 : index
    %0 = vector.load %arg1[%c0, %c0_0] : memref<32x128xf32, #tpu.memory_space<vmem>>, vector<32x128xf32>
    %c0_1 = arith.constant 0 : index
    %c0_2 = arith.constant 0 : index
    %1 = vector.load %arg2[%c0_1, %c0_2] : memref<32x128xf32, #tpu.memory_space<vmem>>, vector<32x128xf32>
    %2 = arith.subf %0, %1 : vector<32x128xf32>
    %3 = arith.mulf %2, %2 : vector<32x128xf32>
    %4 = vector.shape_cast %3 : vector<32x128xf32> to vector<4x8x128xf32>
    %cst = arith.constant dense<0.000000e+00> : vector<8x128xf32>
    %5 = vector.multi_reduction <add>, %4, %cst [0] : vector<4x8x128xf32> to vector<8x128xf32>
    %6 = vector.shape_cast %5 : vector<8x128xf32> to vector<1x8x128xf32>
    %c0_3 = arith.constant 0 : index
    %c0_4 = arith.constant 0 : index
    %c0_5 = arith.constant 0 : index
    %7 = vector.load %arg3[%c0_3, %c0_4, %c0_5] : memref<1x8x128xf32, #tpu.memory_space<vmem>>, vector<1x8x128xf32>
    tpu.vector_store %arg3[%c0_3, %c0_4, %c0_5], %6 {strides = array<i32>} : memref<1x8x128xf32, #tpu.memory_space<vmem>>, vector<1x8x128xf32>,
    return
  }
  func.func @transform_0(%arg0: i32) -> (i32, i32) {
    %c0_i32 = arith.constant 0 : i32
    %c0_i32_0 = arith.constant 0 : i32
    return %arg0, %c0_i32 : i32, i32
  }
  func.func @transform_1(%arg0: i32) -> (i32, i32) {
    %c0_i32 = arith.constant 0 : i32
    %c0_i32_0 = arith.constant 0 : i32
    return %arg0, %c0_i32 : i32, i32
  }
  func.func @transform_2(%arg0: i32) -> (i32, i32, i32) {
    %c0_i32 = arith.constant 0 : i32
    %c0_i32_0 = arith.constant 0 : i32
    %c0_i32_1 = arith.constant 0 : i32
    return %arg0, %c0_i32, %c0_i32_0 : i32, i32, i32
  }
}

</mosaic_0001>

<bundles_post_ra>
// kernel: tpu_custom_call.1
= control target key start
LH: loop header
LB: loop body
LE: loop exit
PB: predicated region body
PF: predicated region fallthrough
CT: control target
= control target key end

     0   :  { %7 = vsyncpa [#allocation3], 0  ;;  %s194_s0 = inlined_call_operand.hbm [shape: f32[32,128], index: 0, kind: input, shape index: {}]   ;;  %s195_s1 = inlined_call_operand.hbm [shape: f32[32,128], index: 1, kind: input, shape index: {}]   ;;  %s196_s2 = inlined_call_operand.hbm [shape: f32[1,8,128], index: 2, kind: output, shape index: {}]  }
   0x1   :  { %8 = vsyncpa [#allocation6], 0 }
   0x2   :  { %9 = vsyncpa [#allocation4], 0  ;;  %s14_s11 = sshll.u32 %s194_s0, 4  ;;  %s165_s12 = smov [#allocation2]   ;;  %s15_s11 = int_to_ptr.hbm [resolvable:$true] %s14_s11 }
   0x3   :  { %s16_s13 = sshll.u32 %s165_s12, 4  ;;  %s27_s16 = sshll.u32 %s195_s1, 4  ;;  %s17_s13 = int_to_ptr.vmem [resolvable:$true] %s16_s13  ;;  %s28_s16 = int_to_ptr.hbm [resolvable:$true] %s27_s16 }
   0x4   :  { %s166_s17 = smov 128   ;;  %s167_s18 = smov 8  }
   0x5   :  { %22 = dma.hbm_to_vmem [thread:$0]  %s15_s11, 512, %s17_s13, [#allocation3], %s166_s17, %s166_s17, %s167_s18  }
   0x6   :  { %s168_s19 = smov [#allocation5]  }
   0x7   :  { %s29_s20 = sshll.u32 %s168_s19, 4  ;;  %s30_s20 = int_to_ptr.vmem [resolvable:$true] %s29_s20 }
   0x8   :  { %35 = dma.hbm_to_vmem [thread:$0]  %s28_s16, 512, %s30_s20, [#allocation6], %s166_s17, %s166_s17, %s167_s18  }
   0x9   :  { %159 = dma.done.wait [#allocation3], 512  }
   0xa   :  { %160 = vsyncadd [#allocation3], 4294966784 }
   0xb   :  { %161 = dma.done.wait [#allocation6], 512  }
   0xc   :  { %162 = vsyncadd [#allocation6], 4294966784  ;;  %v44_v0 = vld [vmem:[#allocation2] sm:$0xff]  ;;  %v45_v1 = vld [vmem:[#allocation2 + $0x8] sm:$0xff]  ;;  %s169_s0 = smov [#allocation7]   ;;  %s71_s23 = sshll.u32 %s196_s2, 4  ;;  %s72_s23 = int_to_ptr.hbm [resolvable:$true] %s71_s23 }
   0xd   :  { %v46_v2 = vld [vmem:[#allocation2 + $0x10] sm:$0xff]  ;;  %v47_v3 = vld [vmem:[#allocation2 + $0x18] sm:$0xff]  ;;  %v48_v4 = vld [vmem:[#allocation5] sm:$0xff]  ;;  %s69_s1 = sshll.u32 %s169_s0, 4  ;;  %s70_s1 = int_to_ptr.vmem [resolvable:$true] %s69_s1 }
   0xe   :  { %v49_v5 = vld [vmem:[#allocation5 + $0x8] sm:$0xff]  ;;  %v50_v6 = vld [vmem:[#allocation5 + $0x10] sm:$0xff]  ;;  %v51_v7 = vld [vmem:[#allocation5 + $0x18] sm:$0xff]  ;;  %v52_v8 = vsub.f32 %v44_v0, %v48_v4 }
   0xf   :  { %v53_v9 = vsub.f32 %v45_v1, %v49_v5  ;;  %v54_v10 = vsub.f32 %v46_v2, %v50_v6  ;;  %v55_v11 = vsub.f32 %v47_v3, %v51_v7 }
  0x10   :  { %v56_v12 = vmul.f32 %v52_v8, %v52_v8 }
  0x11   :  { %v57_v13 = vmul.f32 %v53_v9, %v53_v9  ;;  %v58_v14 = vmul.f32 %v54_v10, %v54_v10  ;;  %v59_v15 = vmul.f32 %v55_v11, %v55_v11 }
  0x13   :  { %v60_v16 = vadd.f32 %v57_v13, %v56_v12 }
  0x15   :  { %v61_v17 = vadd.f32 %v60_v16, %v58_v14 }
  0x17   :  { %v62_v18 = vadd.f32 %v61_v17, %v59_v15 }
  0x19   :  { %63 = vst [vmem:[#allocation7] sm:$0xff] %v62_v18 }
  0x1a   :  { %74 = dma.vmem_to_hbm [thread:$0]  %s70_s1, 128, %s72_s23, [#allocation4]  }
  0x1b   :  { %163 = dma.done.wait [#allocation4], 128  }
  0x1c   :  { %164 = vsyncadd [#allocation4], 4294967168 }
  0x1d   :  { %79 = vsyncpa [#allocation3], 1 }
  0x1e   :  { %80 = vsyncpa [#allocation6], 1 }
  0x1f   :  { %81 = vsyncpa [#allocation4], 1 }

</bundles_post_ra>
